<compile_context>
chip_gen: v7x
topology: tpu7x:2x2x1
jax: 0.10.0
libtpu: 0.0.40
codegen_flags: <defaults>
</compile_context>

<pallas_src>
import functools
import math

import jax
import jax.numpy as jnp
from jax import lax
from jax.experimental import pallas as pl
from jax.experimental.pallas import tpu as pltpu


def mha_kernel(q_ref, k_ref, v_ref, mask_ref,
               wq_ref, bq_ref, wk_ref, bk_ref, wv_ref, bv_ref,
               out_ref, *, num_heads, d_k, d_v):
    """One grid step = one batch element. Refs are 2-D (batch dim squeezed)."""
    q_in = q_ref[...]      # (S, D)
    k_in = k_ref[...]      # (S, D)
    v_in = v_ref[...]      # (S, D)

    # Additive mask bias, computed ONCE per grid step (hoisted out of head loop).
    neg_bias = jnp.where(mask_ref[...] == 0.0, -jnp.inf, 0.0)   # (S, S)

    # Fused wide projections: one MXU pass each with N = H*d_k / H*d_v.
    # Note: Wq / bq already carry the 1/sqrt(d_k) scale (folded host-side).
    q_all = jnp.dot(q_in, wq_ref[...], preferred_element_type=jnp.float32) + bq_ref[...]
    k_all = jnp.dot(k_in, wk_ref[...], preferred_element_type=jnp.float32) + bk_ref[...]
    v_all = jnp.dot(v_in, wv_ref[...], preferred_element_type=jnp.float32) + bv_ref[...]

    head_outs = []
    for h in range(num_heads):                       # static unroll over heads
        q_h = q_all[:, h * d_k:(h + 1) * d_k]        # (S, d_k) static lane slices
        k_h = k_all[:, h * d_k:(h + 1) * d_k]        # (S, d_k)
        v_h = v_all[:, h * d_v:(h + 1) * d_v]        # (S, d_v)

        # q_h @ k_h.T without materializing the transpose.
        scores = lax.dot_general(
            q_h, k_h,
            dimension_numbers=(((1,), (1,)), ((), ())),
            preferred_element_type=jnp.float32)      # (S, S)
        scores = scores + neg_bias

        # softmax over last axis
        m = jnp.max(scores, axis=-1, keepdims=True)
        e = jnp.exp(scores - m)
        denom = jnp.sum(e, axis=-1, keepdims=True)
        attn = e * pl.reciprocal(denom, approx=True)

        head_outs.append(
            jnp.dot(attn, v_h, preferred_element_type=jnp.float32))   # (S, d_v)

    # Single full-width store of the concatenated heads (lane-dense output slab).
    out_ref[...] = jnp.concatenate(head_outs, axis=-1).astype(out_ref.dtype)


def multi_head_attention(query, key, value, mask, params):
    """params: stacked per-head weights Wq/Wk/Wv (H, D, d_k|d_v), biases (H, 1, d_k|d_v)."""
    B, S, D = query.shape
    H, _, d_k = params["Wq"].shape
    d_v = params["Wv"].shape[-1]
    scale = 1.0 / math.sqrt(d_k)

    # Host-side fusion of per-head weights into wide matrices:
    #   (H, D, d_k) -> (D, H*d_k); column h*d_k + j <-> head h, feature j.
    wq = (jnp.transpose(params["Wq"], (1, 0, 2)).reshape(D, H * d_k) * scale)
    wk = jnp.transpose(params["Wk"], (1, 0, 2)).reshape(D, H * d_k)
    wv = jnp.transpose(params["Wv"], (1, 0, 2)).reshape(D, H * d_v)
    bq = params["bq"].reshape(1, H * d_k) * scale
    bk = params["bk"].reshape(1, H * d_k)
    bv = params["bv"].reshape(1, H * d_v)

    kernel = functools.partial(mha_kernel, num_heads=H, d_k=d_k, d_v=d_v)

    batched = lambda shape: pl.BlockSpec((pl.Squeezed(),) + shape,
                                         lambda b: (b, 0, 0))
    resident = lambda shape: pl.BlockSpec(shape, lambda b: (0, 0))

    return pl.pallas_call(
        kernel,
        out_shape=jax.ShapeDtypeStruct((B, S, H * d_v), jnp.float32),
        grid_spec=pltpu.PrefetchScalarGridSpec(
            num_scalar_prefetch=0,
            grid=(B,),
            in_specs=[
                batched((S, D)),            # query  (batch dim squeezed)
                batched((S, D)),            # key
                batched((S, D)),            # value
                batched((S, S)),            # mask
                resident((D, H * d_k)),     # Wq (scale folded in)
                resident((1, H * d_k)),     # bq (scale folded in)
                resident((D, H * d_k)),     # Wk
                resident((1, H * d_k)),     # bk
                resident((D, H * d_v)),     # Wv
                resident((1, H * d_v)),     # bv
            ],
            out_specs=pl.BlockSpec((pl.Squeezed(), S, H * d_v),
                                   lambda b: (b, 0, 0)),
        ),
        compiler_params=pltpu.CompilerParams(
            dimension_semantics=("parallel",)),
    )(query, key, value, mask, wq, bq, wk, bk, wv, bv)


def reference_mha(query, key, value, mask, params):
    """Pure-JAX reference mirroring the PyTorch forward exactly (per-batch mask)."""
    H, _, d_k = params["Wq"].shape
    outs = []
    for h in range(H):
        q = query @ params["Wq"][h] + params["bq"][h]
        k = key @ params["Wk"][h] + params["bk"][h]
        v = value @ params["Wv"][h] + params["bv"][h]
        scores = jnp.einsum("bqd,bkd->bqk", q, k) / math.sqrt(d_k)
        scores = jnp.where(mask == 0.0, -jnp.inf, scores)
        attn = jax.nn.softmax(scores, axis=-1)
        outs.append(attn @ v)
    return jnp.concatenate(outs, axis=-1)


if __name__ == "__main__":
    # small shapes: h=4 heads, d_model=32 -> d_k = d_v = 8; batch=2, seq=8
    H, D = 4, 32
    d_k = d_v = D // H
    B, S = 2, 8

    key0 = jax.random.PRNGKey(0)
    kq, kk, kv, kwq, kwk, kwv, kbq, kbk, kbv = jax.random.split(key0, 9)

    query = jax.random.normal(kq, (B, S, D), dtype=jnp.float32)
    key_in = jax.random.normal(kk, (B, S, D), dtype=jnp.float32)
    value = jax.random.normal(kv, (B, S, D), dtype=jnp.float32)

    # causal mask (per batch), nonzero = attend, 0 = masked -> -inf
    causal = jnp.tril(jnp.ones((S, S), dtype=jnp.float32))
    mask = jnp.broadcast_to(causal, (B, S, S))

    w_scale = 1.0 / math.sqrt(D)
    params = {
        "Wq": jax.random.normal(kwq, (H, D, d_k), dtype=jnp.float32) * w_scale,
        "Wk": jax.random.normal(kwk, (H, D, d_k), dtype=jnp.float32) * w_scale,
        "Wv": jax.random.normal(kwv, (H, D, d_v), dtype=jnp.float32) * w_scale,
        "bq": jax.random.normal(kbq, (H, 1, d_k), dtype=jnp.float32) * 0.1,
        "bk": jax.random.normal(kbk, (H, 1, d_k), dtype=jnp.float32) * 0.1,
        "bv": jax.random.normal(kbv, (H, 1, d_v), dtype=jnp.float32) * 0.1,
    }

    out = multi_head_attention(query, key_in, value, mask, params)
    out = jax.block_until_ready(out)

    ref = reference_mha(query, key_in, value, mask, params)
    assert out.shape == (B, S, H * d_v)
    # tolerance allows for the EUP approximate reciprocal in the softmax normalizer
    assert jnp.allclose(out, ref, rtol=2e-3, atol=2e-3), "mismatch vs reference"

    print("KERNEL_OK")
</pallas_src>

<mosaic_0001>
module attributes {stable_mosaic.version = 11 : i64} {
  func.func @mha_kernel(%arg0: i32, %arg1: memref<1x8x32xf32, #tpu.memory_space<vmem>>, %arg2: memref<1x8x32xf32, #tpu.memory_space<vmem>>, %arg3: memref<1x8x32xf32, #tpu.memory_space<vmem>>, %arg4: memref<1x8x8xf32, #tpu.memory_space<vmem>>, %arg5: memref<32x32xf32, #tpu.memory_space<vmem>>, %arg6: memref<1x32xf32, #tpu.memory_space<vmem>>, %arg7: memref<32x32xf32, #tpu.memory_space<vmem>>, %arg8: memref<1x32xf32, #tpu.memory_space<vmem>>, %arg9: memref<32x32xf32, #tpu.memory_space<vmem>>, %arg10: memref<1x32xf32, #tpu.memory_space<vmem>>, %arg11: memref<1x8x32xf32, #tpu.memory_space<vmem>>) attributes {dimension_semantics = [#tpu.dimension_semantics<parallel>], iteration_bounds = array<i64: 2>, scalar_prefetch = 0 : i64, scratch_operands = 0 : i64, tpu.core_type = #tpu.core_type<tc>, window_params = [{transform_indices = @transform_0, window_bounds = array<i64: 1, 8, 32>}, {transform_indices = @transform_1, window_bounds = array<i64: 1, 8, 32>}, {transform_indices = @transform_2, window_bounds = array<i64: 1, 8, 32>}, {transform_indices = @transform_3, window_bounds = array<i64: 1, 8, 8>}, {pipeline_mode = #tpu.pipeline_mode<synchronous>, transform_indices = @transform_4, window_bounds = array<i64: 32, 32>}, {pipeline_mode = #tpu.pipeline_mode<synchronous>, transform_indices = @transform_5, window_bounds = array<i64: 1, 32>}, {pipeline_mode = #tpu.pipeline_mode<synchronous>, transform_indices = @transform_6, window_bounds = array<i64: 32, 32>}, {pipeline_mode = #tpu.pipeline_mode<synchronous>, transform_indices = @transform_7, window_bounds = array<i64: 1, 32>}, {pipeline_mode = #tpu.pipeline_mode<synchronous>, transform_indices = @transform_8, window_bounds = array<i64: 32, 32>}, {pipeline_mode = #tpu.pipeline_mode<synchronous>, transform_indices = @transform_9, window_bounds = array<i64: 1, 32>}, {transform_indices = @transform_10, window_bounds = array<i64: 1, 8, 32>}]} {
    %c0 = arith.constant 0 : index
    %c0_0 = arith.constant 0 : index
    %c0_1 = arith.constant 0 : index
    %0 = vector.load %arg1[%c0, %c0_0, %c0_1] : memref<1x8x32xf32, #tpu.memory_space<vmem>>, vector<1x8x32xf32>
    %1 = vector.shape_cast %0 : vector<1x8x32xf32> to vector<8x32xf32>
    %c0_2 = arith.constant 0 : index
    %c0_3 = arith.constant 0 : index
    %c0_4 = arith.constant 0 : index
    %2 = vector.load %arg2[%c0_2, %c0_3, %c0_4] : memref<1x8x32xf32, #tpu.memory_space<vmem>>, vector<1x8x32xf32>
    %3 = vector.shape_cast %2 : vector<1x8x32xf32> to vector<8x32xf32>
    %c0_5 = arith.constant 0 : index
    %c0_6 = arith.constant 0 : index
    %c0_7 = arith.constant 0 : index
    %4 = vector.load %arg3[%c0_5, %c0_6, %c0_7] : memref<1x8x32xf32, #tpu.memory_space<vmem>>, vector<1x8x32xf32>
    %5 = vector.shape_cast %4 : vector<1x8x32xf32> to vector<8x32xf32>
    %c0_8 = arith.constant 0 : index
    %c0_9 = arith.constant 0 : index
    %c0_10 = arith.constant 0 : index
    %6 = vector.load %arg4[%c0_8, %c0_9, %c0_10] : memref<1x8x8xf32, #tpu.memory_space<vmem>>, vector<1x8x8xf32>
    %7 = vector.shape_cast %6 : vector<1x8x8xf32> to vector<8x8xf32>
    %cst = arith.constant 0.000000e+00 : f32
    %8 = vector.broadcast %cst : f32 to vector<8x8xf32>
    %9 = arith.cmpf oeq, %7, %8 : vector<8x8xf32>
    %cst_11 = arith.constant 0xFF800000 : f32
    %cst_12 = arith.constant 0.000000e+00 : f32
    %10 = vector.broadcast %cst_11 : f32 to vector<8x8xf32>
    %11 = vector.broadcast %cst_12 : f32 to vector<8x8xf32>
    %12 = arith.select %9, %10, %11 : vector<8x8xi1>, vector<8x8xf32>
    %c0_13 = arith.constant 0 : index
    %c0_14 = arith.constant 0 : index
    %13 = vector.load %arg5[%c0_13, %c0_14] : memref<32x32xf32, #tpu.memory_space<vmem>>, vector<32x32xf32>
    %cst_15 = arith.constant dense<0.000000e+00> : vector<8x32xf32>
    %14 = tpu.matmul %1, %13, %cst_15 {dimension_numbers = #tpu.dot_dimension_numbers<[1], [0], [0], [1], [0, 0, 1, 1], [], []>} : vector<8x32xf32>, vector<32x32xf32>, vector<8x32xf32> -> vector<8x32xf32>
    %c0_16 = arith.constant 0 : index
    %c0_17 = arith.constant 0 : index
    %15 = vector.load %arg6[%c0_16, %c0_17] : memref<1x32xf32, #tpu.memory_space<vmem>>, vector<1x32xf32>
    %16 = vector.broadcast %15 : vector<1x32xf32> to vector<8x32xf32>
    %17 = arith.addf %14, %16 : vector<8x32xf32>
    %c0_18 = arith.constant 0 : index
    %c0_19 = arith.constant 0 : index
    %18 = vector.load %arg7[%c0_18, %c0_19] : memref<32x32xf32, #tpu.memory_space<vmem>>, vector<32x32xf32>
    %cst_20 = arith.constant dense<0.000000e+00> : vector<8x32xf32>
    %19 = tpu.matmul %3, %18, %cst_20 {dimension_numbers = #tpu.dot_dimension_numbers<[1], [0], [0], [1], [0, 0, 1, 1], [], []>} : vector<8x32xf32>, vector<32x32xf32>, vector<8x32xf32> -> vector<8x32xf32>
    %c0_21 = arith.constant 0 : index
    %c0_22 = arith.constant 0 : index
    %20 = vector.load %arg8[%c0_21, %c0_22] : memref<1x32xf32, #tpu.memory_space<vmem>>, vector<1x32xf32>
    %21 = vector.broadcast %20 : vector<1x32xf32> to vector<8x32xf32>
    %22 = arith.addf %19, %21 : vector<8x32xf32>
    %c0_23 = arith.constant 0 : index
    %c0_24 = arith.constant 0 : index
    %23 = vector.load %arg9[%c0_23, %c0_24] : memref<32x32xf32, #tpu.memory_space<vmem>>, vector<32x32xf32>
    %cst_25 = arith.constant dense<0.000000e+00> : vector<8x32xf32>
    %24 = tpu.matmul %5, %23, %cst_25 {dimension_numbers = #tpu.dot_dimension_numbers<[1], [0], [0], [1], [0, 0, 1, 1], [], []>} : vector<8x32xf32>, vector<32x32xf32>, vector<8x32xf32> -> vector<8x32xf32>
    %c0_26 = arith.constant 0 : index
    %c0_27 = arith.constant 0 : index
    %25 = vector.load %arg10[%c0_26, %c0_27] : memref<1x32xf32, #tpu.memory_space<vmem>>, vector<1x32xf32>
    %26 = vector.broadcast %25 : vector<1x32xf32> to vector<8x32xf32>
    %27 = arith.addf %24, %26 : vector<8x32xf32>
    %28 = vector.extract_strided_slice %17 {offsets = [0, 0], sizes = [8, 8], strides = [1, 1]} : vector<8x32xf32> to vector<8x8xf32>
    %29 = vector.extract_strided_slice %22 {offsets = [0, 0], sizes = [8, 8], strides = [1, 1]} : vector<8x32xf32> to vector<8x8xf32>
    %30 = vector.extract_strided_slice %27 {offsets = [0, 0], sizes = [8, 8], strides = [1, 1]} : vector<8x32xf32> to vector<8x8xf32>
    %cst_28 = arith.constant dense<0.000000e+00> : vector<8x8xf32>
    %31 = tpu.matmul %28, %29, %cst_28 {dimension_numbers = #tpu.dot_dimension_numbers<[1], [1], [0], [0], [0, 0, 1, 0], [], []>} : vector<8x8xf32>, vector<8x8xf32>, vector<8x8xf32> -> vector<8x8xf32>
    %32 = arith.addf %31, %12 : vector<8x8xf32>
    %cst_29 = arith.constant dense<0xFF800000> : vector<8xf32>
    %33 = vector.multi_reduction <maximumf>, %32, %cst_29 [1] : vector<8x8xf32> to vector<8xf32>
    %34 = vector.shape_cast %33 : vector<8xf32> to vector<8x1xf32>
    %35 = vector.broadcast %34 : vector<8x1xf32> to vector<8x8xf32>
    %36 = arith.subf %32, %35 : vector<8x8xf32>
    %37 = math.exp %36 : vector<8x8xf32>
    %cst_30 = arith.constant dense<0.000000e+00> : vector<8xf32>
    %38 = vector.multi_reduction <add>, %37, %cst_30 [1] : vector<8x8xf32> to vector<8xf32>
    %39 = vector.shape_cast %38 : vector<8xf32> to vector<8x1xf32>
    %40 = tpu.reciprocal %39 {approx = true} : vector<8x1xf32> -> vector<8x1xf32>
    %41 = vector.broadcast %40 : vector<8x1xf32> to vector<8x8xf32>
    %42 = arith.mulf %37, %41 : vector<8x8xf32>
    %cst_31 = arith.constant dense<0.000000e+00> : vector<8x8xf32>
    %43 = tpu.matmul %42, %30, %cst_31 {dimension_numbers = #tpu.dot_dimension_numbers<[1], [0], [0], [1], [0, 0, 1, 1], [], []>} : vector<8x8xf32>, vector<8x8xf32>, vector<8x8xf32> -> vector<8x8xf32>
    %44 = vector.extract_strided_slice %17 {offsets = [0, 8], sizes = [8, 8], strides = [1, 1]} : vector<8x32xf32> to vector<8x8xf32>
    %45 = vector.extract_strided_slice %22 {offsets = [0, 8], sizes = [8, 8], strides = [1, 1]} : vector<8x32xf32> to vector<8x8xf32>
    %46 = vector.extract_strided_slice %27 {offsets = [0, 8], sizes = [8, 8], strides = [1, 1]} : vector<8x32xf32> to vector<8x8xf32>
    %cst_32 = arith.constant dense<0.000000e+00> : vector<8x8xf32>
    %47 = tpu.matmul %44, %45, %cst_32 {dimension_numbers = #tpu.dot_dimension_numbers<[1], [1], [0], [0], [0, 0, 1, 0], [], []>} : vector<8x8xf32>, vector<8x8xf32>, vector<8x8xf32> -> vector<8x8xf32>
    %48 = arith.addf %47, %12 : vector<8x8xf32>
    %cst_33 = arith.constant dense<0xFF800000> : vector<8xf32>
    %49 = vector.multi_reduction <maximumf>, %48, %cst_33 [1] : vector<8x8xf32> to vector<8xf32>
    %50 = vector.shape_cast %49 : vector<8xf32> to vector<8x1xf32>
    %51 = vector.broadcast %50 : vector<8x1xf32> to vector<8x8xf32>
    %52 = arith.subf %48, %51 : vector<8x8xf32>
    %53 = math.exp %52 : vector<8x8xf32>
    %cst_34 = arith.constant dense<0.000000e+00> : vector<8xf32>
    %54 = vector.multi_reduction <add>, %53, %cst_34 [1] : vector<8x8xf32> to vector<8xf32>
    %55 = vector.shape_cast %54 : vector<8xf32> to vector<8x1xf32>
    %56 = tpu.reciprocal %55 {approx = true} : vector<8x1xf32> -> vector<8x1xf32>
    %57 = vector.broadcast %56 : vector<8x1xf32> to vector<8x8xf32>
    %58 = arith.mulf %53, %57 : vector<8x8xf32>
    %cst_35 = arith.constant dense<0.000000e+00> : vector<8x8xf32>
    %59 = tpu.matmul %58, %46, %cst_35 {dimension_numbers = #tpu.dot_dimension_numbers<[1], [0], [0], [1], [0, 0, 1, 1], [], []>} : vector<8x8xf32>, vector<8x8xf32>, vector<8x8xf32> -> vector<8x8xf32>
    %60 = vector.extract_strided_slice %17 {offsets = [0, 16], sizes = [8, 8], strides = [1, 1]} : vector<8x32xf32> to vector<8x8xf32>
    %61 = vector.extract_strided_slice %22 {offsets = [0, 16], sizes = [8, 8], strides = [1, 1]} : vector<8x32xf32> to vector<8x8xf32>
    %62 = vector.extract_strided_slice %27 {offsets = [0, 16], sizes = [8, 8], strides = [1, 1]} : vector<8x32xf32> to vector<8x8xf32>
    %cst_36 = arith.constant dense<0.000000e+00> : vector<8x8xf32>
    %63 = tpu.matmul %60, %61, %cst_36 {dimension_numbers = #tpu.dot_dimension_numbers<[1], [1], [0], [0], [0, 0, 1, 0], [], []>} : vector<8x8xf32>, vector<8x8xf32>, vector<8x8xf32> -> vector<8x8xf32>
    %64 = arith.addf %63, %12 : vector<8x8xf32>
    %cst_37 = arith.constant dense<0xFF800000> : vector<8xf32>
    %65 = vector.multi_reduction <maximumf>, %64, %cst_37 [1] : vector<8x8xf32> to vector<8xf32>
    %66 = vector.shape_cast %65 : vector<8xf32> to vector<8x1xf32>
    %67 = vector.broadcast %66 : vector<8x1xf32> to vector<8x8xf32>
    %68 = arith.subf %64, %67 : vector<8x8xf32>
    %69 = math.exp %68 : vector<8x8xf32>
    %cst_38 = arith.constant dense<0.000000e+00> : vector<8xf32>
    %70 = vector.multi_reduction <add>, %69, %cst_38 [1] : vector<8x8xf32> to vector<8xf32>
    %71 = vector.shape_cast %70 : vector<8xf32> to vector<8x1xf32>
    %72 = tpu.reciprocal %71 {approx = true} : vector<8x1xf32> -> vector<8x1xf32>
    %73 = vector.broadcast %72 : vector<8x1xf32> to vector<8x8xf32>
    %74 = arith.mulf %69, %73 : vector<8x8xf32>
    %cst_39 = arith.constant dense<0.000000e+00> : vector<8x8xf32>
    %75 = tpu.matmul %74, %62, %cst_39 {dimension_numbers = #tpu.dot_dimension_numbers<[1], [0], [0], [1], [0, 0, 1, 1], [], []>} : vector<8x8xf32>, vector<8x8xf32>, vector<8x8xf32> -> vector<8x8xf32>
    %76 = vector.extract_strided_slice %17 {offsets = [0, 24], sizes = [8, 8], strides = [1, 1]} : vector<8x32xf32> to vector<8x8xf32>
    %77 = vector.extract_strided_slice %22 {offsets = [0, 24], sizes = [8, 8], strides = [1, 1]} : vector<8x32xf32> to vector<8x8xf32>
    %78 = vector.extract_strided_slice %27 {offsets = [0, 24], sizes = [8, 8], strides = [1, 1]} : vector<8x32xf32> to vector<8x8xf32>
    %cst_40 = arith.constant dense<0.000000e+00> : vector<8x8xf32>
    %79 = tpu.matmul %76, %77, %cst_40 {dimension_numbers = #tpu.dot_dimension_numbers<[1], [1], [0], [0], [0, 0, 1, 0], [], []>} : vector<8x8xf32>, vector<8x8xf32>, vector<8x8xf32> -> vector<8x8xf32>
    %80 = arith.addf %79, %12 : vector<8x8xf32>
    %cst_41 = arith.constant dense<0xFF800000> : vector<8xf32>
    %81 = vector.multi_reduction <maximumf>, %80, %cst_41 [1] : vector<8x8xf32> to vector<8xf32>
    %82 = vector.shape_cast %81 : vector<8xf32> to vector<8x1xf32>
    %83 = vector.broadcast %82 : vector<8x1xf32> to vector<8x8xf32>
    %84 = arith.subf %80, %83 : vector<8x8xf32>
    %85 = math.exp %84 : vector<8x8xf32>
    %cst_42 = arith.constant dense<0.000000e+00> : vector<8xf32>
    %86 = vector.multi_reduction <add>, %85, %cst_42 [1] : vector<8x8xf32> to vector<8xf32>
    %87 = vector.shape_cast %86 : vector<8xf32> to vector<8x1xf32>
    %88 = tpu.reciprocal %87 {approx = true} : vector<8x1xf32> -> vector<8x1xf32>
    %89 = vector.broadcast %88 : vector<8x1xf32> to vector<8x8xf32>
    %90 = arith.mulf %85, %89 : vector<8x8xf32>
    %cst_43 = arith.constant dense<0.000000e+00> : vector<8x8xf32>
    %91 = tpu.matmul %90, %78, %cst_43 {dimension_numbers = #tpu.dot_dimension_numbers<[1], [0], [0], [1], [0, 0, 1, 1], [], []>} : vector<8x8xf32>, vector<8x8xf32>, vector<8x8xf32> -> vector<8x8xf32>
    %92 = tpu.concatenate %43, %59, %75, %91 in 1 : vector<8x8xf32>, vector<8x8xf32>, vector<8x8xf32>, vector<8x8xf32> -> vector<8x32xf32>
    %c0_44 = arith.constant 0 : index
    %c0_45 = arith.constant 0 : index
    %c0_46 = arith.constant 0 : index
    %93 = vector.load %arg11[%c0_44, %c0_45, %c0_46] : memref<1x8x32xf32, #tpu.memory_space<vmem>>, vector<1x8x32xf32>
    %94 = vector.shape_cast %93 : vector<1x8x32xf32> to vector<8x32xf32>
    %95 = vector.shape_cast %92 : vector<8x32xf32> to vector<1x8x32xf32>
    tpu.vector_store %arg11[%c0_44, %c0_45, %c0_46], %95 {strides = array<i32>} : memref<1x8x32xf32, #tpu.memory_space<vmem>>, vector<1x8x32xf32>,
    return
  }
  func.func @transform_0(%arg0: i32) -> (i32, i32, i32) {
    %c0_i32 = arith.constant 0 : i32
    %c0_i32_0 = arith.constant 0 : i32
    %c0_i32_1 = arith.constant 0 : i32
    return %arg0, %c0_i32, %c0_i32_0 : i32, i32, i32
  }
  func.func @transform_1(%arg0: i32) -> (i32, i32, i32) {
    %c0_i32 = arith.constant 0 : i32
    %c0_i32_0 = arith.constant 0 : i32
    %c0_i32_1 = arith.constant 0 : i32
    return %arg0, %c0_i32, %c0_i32_0 : i32, i32, i32
  }
  func.func @transform_2(%arg0: i32) -> (i32, i32, i32) {
    %c0_i32 = arith.constant 0 : i32
    %c0_i32_0 = arith.constant 0 : i32
    %c0_i32_1 = arith.constant 0 : i32
    return %arg0, %c0_i32, %c0_i32_0 : i32, i32, i32
  }
  func.func @transform_3(%arg0: i32) -> (i32, i32, i32) {
    %c0_i32 = arith.constant 0 : i32
    %c0_i32_0 = arith.constant 0 : i32
    %c0_i32_1 = arith.constant 0 : i32
    return %arg0, %c0_i32, %c0_i32_0 : i32, i32, i32
  }
  func.func @transform_4(%arg0: i32) -> (i32, i32) {
    %c0_i32 = arith.constant 0 : i32
    %c0_i32_0 = arith.constant 0 : i32
    %c0_i32_1 = arith.constant 0 : i32
    return %c0_i32, %c0_i32_0 : i32, i32
  }
  func.func @transform_5(%arg0: i32) -> (i32, i32) {
    %c0_i32 = arith.constant 0 : i32
    %c0_i32_0 = arith.constant 0 : i32
    %c0_i32_1 = arith.constant 0 : i32
    return %c0_i32, %c0_i32_0 : i32, i32
  }
  func.func @transform_6(%arg0: i32) -> (i32, i32) {
    %c0_i32 = arith.constant 0 : i32
    %c0_i32_0 = arith.constant 0 : i32
    %c0_i32_1 = arith.constant 0 : i32
    return %c0_i32, %c0_i32_0 : i32, i32
  }
  func.func @transform_7(%arg0: i32) -> (i32, i32) {
    %c0_i32 = arith.constant 0 : i32
    %c0_i32_0 = arith.constant 0 : i32
    %c0_i32_1 = arith.constant 0 : i32
    return %c0_i32, %c0_i32_0 : i32, i32
  }
  func.func @transform_8(%arg0: i32) -> (i32, i32) {
    %c0_i32 = arith.constant 0 : i32
    %c0_i32_0 = arith.constant 0 : i32
    %c0_i32_1 = arith.constant 0 : i32
    return %c0_i32, %c0_i32_0 : i32, i32
  }
  func.func @transform_9(%arg0: i32) -> (i32, i32) {
    %c0_i32 = arith.constant 0 : i32
    %c0_i32_0 = arith.constant 0 : i32
    %c0_i32_1 = arith.constant 0 : i32
    return %c0_i32, %c0_i32_0 : i32, i32
  }
  func.func @transform_10(%arg0: i32) -> (i32, i32, i32) {
    %c0_i32 = arith.constant 0 : i32
    %c0_i32_0 = arith.constant 0 : i32
    %c0_i32_1 = arith.constant 0 : i32
    return %arg0, %c0_i32, %c0_i32_0 : i32, i32, i32
  }
}

</mosaic_0001>

<bundles_post_ra>
// kernel: tpu_custom_call.1
= control target key start
LH: loop header
LB: loop body
LE: loop exit
PB: predicated region body
PF: predicated region fallthrough
CT: control target
= control target key end

     0   :  { %s2737_s0 = inlined_call_operand.hbm [shape: f32[2,8,32], index: 0, kind: input, shape index: {}]   ;;  %s2738_s1 = inlined_call_operand.hbm [shape: f32[2,8,32], index: 1, kind: input, shape index: {}]   ;;  %s2739_s2 = inlined_call_operand.hbm [shape: f32[2,8,32], index: 2, kind: input, shape index: {}]   ;;  %s2740_s3 = inlined_call_operand.hbm [shape: f32[2,8,8], index: 3, kind: input, shape index: {}]   ;;  %s2741_s4 = inlined_call_operand.hbm [shape: f32[32,32], index: 4, kind: input, shape index: {}]   ;;  %s2742_s5 = inlined_call_operand.vmem [shape: f32[1,32], index: 5, kind: input, shape index: {}]   ;;  %s2743_s6 = inlined_call_operand.hbm [shape: f32[32,32], index: 6, kind: input, shape index: {}]   ;;  %s2744_s7 = inlined_call_operand.vmem [shape: f32[1,32], index: 7, kind: input, shape index: {}]   ;;  %s2745_s8 = inlined_call_operand.hbm [shape: f32[32,32], index: 8, kind: input, shape index: {}]   ;;  %s2746_s9 = inlined_call_operand.vmem [shape: f32[1,32], index: 9, kind: input, shape index: {}]   ;;  %s2747_s10 = inlined_call_operand.hbm [shape: f32[2,8,32], index: 10, kind: output, shape index: {}]  }
   0x1   :  { %2768 = sst [smem:[#allocation26_spill]] %s2738_s1 }
   0x2   :  { %2769 = sst [smem:[#allocation27_spill]] %s2741_s4 }
   0x3   :  { %2770 = sst [smem:[#allocation28_spill]] %s2743_s6 }
   0x4   :  { %2771 = sst [smem:[#allocation29_spill]] %s2747_s10 }
   0x5   :  { %15 = vsyncpa [#allocation3], 0 }
   0x6   :  { %17 = vsyncpa [#allocation3 + $0x1], 0 }
   0x7   :  { %18 = vsyncpa [#allocation6], 0 }
   0x8   :  { %20 = vsyncpa [#allocation6 + $0x1], 0 }
   0x9   :  { %21 = vsyncpa [#allocation9], 0 }
   0xa   :  { %23 = vsyncpa [#allocation9 + $0x1], 0 }
   0xb   :  { %24 = vsyncpa [#allocation12], 0 }
   0xc   :  { %25 = vsyncpa [#allocation4], 0 }
   0xd   :  { %27 = vsyncpa [#allocation4 + $0x1], 0  ;;  %s2286_s13 = smov 0   ;;  %s2288_s14 = smov 0  }
   0xe   :  { %s2290_s15 = smov 0   ;;  %s2292_s16 = smov 0  }
   0xf LB: > { %2772 = sst [smem:[#allocation21_spill]] %s2198_s13  ;;  %s2307_s17 = sadd.s32 4294967295, %s2210_s16   ;;  %s2210_s16 = sphi %s2292_s16, %s2811_s16   ;;  %s2206_s15 = sphi %s2290_s15, %s2815_s15   ;;  %s2202_s14 = sphi %s2288_s14, %s2814_s14   ;;  %s2198_s13 = sphi %s2286_s13, %s2813_s13  }
  0x10   : > { %s1638_s18 = sadd.s32 4294967294, %s2210_s16   ;;  %p53_p0 = scmp.ne.s32.totalorder %s2202_s14, %s2198_s13 }
  0x11   : > { %p2748_p1 = scmp.eq.s32.totalorder %s2307_s17, 0  ;;  %p287_p3 = scmp.eq.s32.totalorder %s1638_s18, 1 }
  0x12   : > { %p1639_p5 = scmp.ge.s32.totalorder %s2210_s16, 1  ;;  %p294_p7 = scmp.lt.s32.totalorder %s2210_s16, 3 }
  0x13   : > { %p2316_p4 = por %p2748_p1, %p53_p0  ;;  %p2321_p6 = por %p287_p3, %p53_p0 }
  0x14   : > { %p2326_p8 = pnand %p1639_p5, %p294_p7  ;;  %s2212_s22 = smov [#allocation10]  }
  0x15   : > { %s2773_s19 = scalar_select %p2316_p4, 1, 0 }
  0x16   : > { %s2774_s20 = scalar_select %p2321_p6, 1, 0 }
  0x17   : > { %s2776_s21 = scalar_select %p2326_p8, 1, 0 }
  0x18   : > { %2775 = sst [smem:[#allocation22_spill]] %s2774_s20  ;;  %s306_s23 = sshll.u32 %s2212_s22, 4  ;;  %s2330_s23 = int_to_ptr.vmem [resolvable:$true] %s306_s23 }
  0x19   : > { %p1827_p9 = pneg %p2326_p8  ;;  %s2213_s25 = smov [#allocation11]  }
  0x1a   : > { %s322_s26 = sshll.u32 %s2213_s25, 4  ;;  %s2778_s4 = sld [smem:[#allocation27_spill]]  ;;  %s2341_s26 = int_to_ptr.vmem [resolvable:$true] %s322_s26 }
  0x1b   : > { %p2337_p11 = pnand %p1827_p9, %p2748_p1 }
  0x1d   : > { %s2777_s24 = scalar_select %p2337_p11, 1, 0 }
  0x1e   : > { %p2351_p13 = pneg %p2337_p11 }
  0x20   : > { %s1924_s29 = scalar_lea.hbm %s2778_s4, 512 }
  0x21   : > { %p1925_p12 = scmp.ne.s32.totalorder %s2778_s4, %s1924_s29  ;;  %p1931_p5 = scmp.lt.u32.totalorder %s1924_s29, %s2778_s4 }
  0x22   : > { %s2779_s12 = scalar_select %p2351_p13, 1, 0 }
  0x23   : > { %p1927_p0 = pnand %p2351_p13, %p1925_p12 }
  0x25   : > { %p1928_p3 = pneg %p1927_p0 }
  0x27   : > { %p1933_p7 = pnand %p1931_p5, %p1928_p3 }
  0x29   : > { %1936 = shalt.err (!%p1933_p7)
}
  0x2a   : > { %s1937_s25 = scalar_lea.vmem %s2330_s23, 512  ;;  %p1945_p2 = scmp.lt.s32.totalorder %s2330_s23, %s2330_s23 }
  0x2b   : > { %p1938_p9 = scmp.ne.s32.totalorder %s2330_s23, %s1937_s25  ;;  %p1946_p6 = scmp.lt.s32.totalorder %s1937_s25, %s1937_s25 }
  0x2d   : > { %p1940_p10 = pnand %p1938_p9, %p2351_p13  ;;  %p1947_p12 = por %p1946_p6, %p1945_p2 }
  0x2f   : > { %p1941_p1 = pneg %p1940_p10 }
  0x31   : > { %p1948_p0 = pnand %p1947_p12, %p1941_p1 }
  0x33   : > { %1951 = shalt.err (!%p1948_p0)
}
  0x34   : > { %s2753_s27 = smov 128   ;;  %s2754_s28 = smov 8  }
  0x35   : > { %1830 = dma.hbm_to_vmem [thread:$0]  (!%p2337_p11), %s2778_s4, 512, %s2330_s23, [#allocation9], %s2753_s27, %s2753_s27, %s2754_s28  }
  0x36   : > { %s2780_s6 = sld [smem:[#allocation28_spill]] }
  0x3c   : > { %s1952_s22 = scalar_lea.hbm %s2780_s6, 512 }
  0x3d   : > { %p1953_p1 = scmp.ne.s32.totalorder %s2780_s6, %s1952_s22  ;;  %p1959_p10 = scmp.lt.u32.totalorder %s1952_s22, %s2780_s6 }
  0x3f   : > { %p1955_p2 = pnand %p1953_p1, %p2351_p13 }
  0x41   : > { %p1956_p6 = pneg %p1955_p2 }
  0x43   : > { %p1961_p3 = pnand %p1959_p10, %p1956_p6 }
  0x45   : > { %1964 = shalt.err (!%p1961_p3)
}
  0x46   : > { %s1965_s23 = scalar_lea.vmem %s2341_s26, 512  ;;  %p1973_p12 = scmp.lt.s32.totalorder %s2341_s26, %s2341_s26 }
  0x47   : > { %p1966_p5 = scmp.ne.s32.totalorder %s2341_s26, %s1965_s23  ;;  %p1974_p0 = scmp.lt.s32.totalorder %s1965_s23, %s1965_s23 }
  0x49   : > { %p1968_p7 = pnand %p1966_p5, %p2351_p13  ;;  %p1975_p1 = por %p1974_p0, %p1973_p12 }
  0x4b   : > { %p1969_p9 = pneg %p1968_p7 }
  0x4d   : > { %p1976_p2 = pnand %p1975_p1, %p1969_p9 }
  0x4f   : > { %1979 = shalt.err (!%p1976_p2)
}
  0x50   : > { %1833 = dma.hbm_to_vmem [thread:$0]  (!%p2337_p11), %s2780_s6, 512, %s2341_s26, [#allocation12], %s2753_s27, %s2753_s27, %s2754_s28  }
  0x51   : > { %s2402_s20 = sadd.s32 1, %s2210_s16   ;;  %s40_s29 = sadd.s32 1, %s2206_s15 }
  0x52   : > { %2781 = sst [smem:[#allocation23_spill]] %s2402_s20  ;;  %s37_s30 = ssub.s32 %s2210_s16, %s2402_s20 }
  0x53   : > { %p47_p6 = scmp.ne.s32.totalorder %s2206_s15, %s2202_s14  ;;  %p38_p10 = scmp.eq.s32.totalorder %s37_s30, 0 }
  0x54   : > { %p48_p3 = scmp.eq.s32.totalorder %s2210_s16, 0  ;;  %p2782_p5 = scmp.eq.s32.totalorder %s2307_s17, 1 }
  0x55   : > { %p1857_p9 = scmp.lt.s32.totalorder %s2210_s16, 2  ;;  %s2752_s22 = sand.u32 1, %s2206_s15  }
  0x56   : > { %p2412_p7 = por %p2782_p5, %p47_p6  ;;  %p49_p12 = por %p48_p3, %p47_p6 }
  0x57   : > { %s2418_s18 = scalar_select %p38_p10, %s2206_s15, %s40_s29  }
  0x58   : > { %s2783_s11 = scalar_select %p2412_p7, 1, 0 }
  0x59   : > { %2785 = sst [smem:[#allocation25_spill]] %s2418_s18  ;;  %s2423_s26 = sshll.u32 %s2752_s22, 3 }
  0x5a   : > { %2784 = sst [smem:[#allocation24_spill]] %s2783_s11  ;;  %s2426_s25 = sshll.u32 %s2210_s16, 7 }
  0x5b   : > { %p2428_p0 = pnand %p1857_p9, %p49_p12  ;;  %s2759_s10 = sand.u32 1, %s2210_s16  }
  0x5c   : > { %s2787_s1 = sld [smem:[#allocation26_spill]]  ;;  %s377_s22 = scalar_lea.vmem [#allocation5], %s2423_s26 }
  0x5d   : > { %s2786_s23 = scalar_select %p2428_p0, 1, 0 }
  0x5e   : > { %s384_s27 = sshll.u32 %s377_s22, 4  ;;  %s2444_s28 = scalar_lea.sflag [#allocation6], %s2759_s10  ;;  %s2440_s27 = int_to_ptr.vmem [resolvable:$true] %s384_s27 }
  0x5f   : > { %p2450_p2 = pneg %p2428_p0 }
  0x62   : > { %s2437_s29 = scalar_lea.hbm %s2787_s1, %s2426_s25  ;;  %s1985_s22 = scalar_lea.hbm %s2787_s1, 256 }
  0x63   : > { %s1980_s4 = scalar_lea.hbm %s2437_s29, 128  ;;  %p1986_p3 = scmp.lt.u32.totalorder %s2437_s29, %s2787_s1 }
  0x64   : > { %p1981_p1 = scmp.ne.s32.totalorder %s2437_s29, %s1980_s4  ;;  %p1987_p5 = scmp.lt.u32.totalorder %s1985_s22, %s1980_s4 }
  0x65   : > { %p1989_p12 = scmp.lt.u32.totalorder %s1980_s4, %s2437_s29 }
  0x66   : > { %p1983_p6 = pnand %p2450_p2, %p1981_p1  ;;  %p1988_p9 = por %p1987_p5, %p1986_p3 }
  0x68   : > { %p1984_p10 = pneg %p1983_p6  ;;  %p1990_p7 = por %p1989_p12, %p1988_p9 }
  0x6a   : > { %p1991_p4 = pnand %p1990_p7, %p1984_p10 }
  0x6c   : > { %1994 = shalt.err (!%p1991_p4)
}
  0x6d   : > { %s1995_s10 = scalar_lea.vmem %s2440_s27, 128  ;;  %s2216_s13 = smov [#allocation5]  }
  0x6e   : > { %p1996_p1 = scmp.ne.s32.totalorder %s2440_s27, %s1995_s10  ;;  %s2000_s30 = sshll.u32 %s2216_s13, 4  ;;  %s2001_s30 = int_to_ptr.vmem [resolvable:$false] %s2000_s30 }
  0x6f   : > { %s2002_s20 = scalar_lea.vmem %s2001_s30, 256  ;;  %p2003_p11 = scmp.lt.s32.totalorder %s2440_s27, %s2001_s30 }
  0x70   : > { %p1998_p6 = pnand %p1996_p1, %p2450_p2  ;;  %p2004_p13 = scmp.lt.s32.totalorder %s2002_s20, %s1995_s10 }
  0x72   : > { %p1999_p8 = pneg %p1998_p6  ;;  %p2005_p3 = por %p2004_p13, %p2003_p11 }
  0x74   : > { %p2006_p5 = pnand %p2005_p3, %p1999_p8 }
  0x76   : > { %2009 = shalt.err (!%p2006_p5)
}
  0x77   : > { %1843 = dma.hbm_to_vmem [thread:$0]  (!%p2428_p0), %s2437_s29, 128, %s2440_s27, %s2444_s28  }
  0x78   : > { %s2217_s4 = smov [#allocation13]   ;;  %s2010_s13 = scalar_lea.hbm %s2745_s8, 512 }
  0x79   : > { %s338_s18 = sshll.u32 %s2217_s4, 4  ;;  %p2011_p4 = scmp.ne.s32.totalorder %s2745_s8, %s2010_s13  ;;  %s339_s18 = int_to_ptr.vmem [resolvable:$true] %s338_s18 }
  0x7a   : > { %p2789_p8 = scmp.ne.s32.totalorder %s2779_s12, 0  ;;  %p2017_p7 = scmp.lt.u32.totalorder %s2010_s13, %s2745_s8 }
  0x7c   : > { %p2013_p11 = pnand %p2011_p4, %p2789_p8 }
  0x7e   : > { %p2014_p13 = pneg %p2013_p11 }
  0x80   : > { %p2019_p10 = pnand %p2017_p7, %p2014_p13 }
  0x82   : > { %2022 = shalt.err (!%p2019_p10)
}
  0x83   : > { %s2023_s27 = scalar_lea.vmem %s339_s18, 512  ;;  %p2031_p6 = scmp.lt.s32.totalorder %s339_s18, %s339_s18 }
  0x84   : > { %p2024_p9 = scmp.ne.s32.totalorder %s339_s18, %s2023_s27  ;;  %p2032_p3 = scmp.lt.s32.totalorder %s2023_s27, %s2023_s27 }
  0x86   : > { %p2026_p12 = pnand %p2024_p9, %p2789_p8  ;;  %p2033_p5 = por %p2032_p3, %p2031_p6 }
  0x88   : > { %p2027_p1 = pneg %p2026_p12 }
  0x8a   : > { %p2034_p0 = pnand %p2033_p5, %p2027_p1 }
  0x8c   : > { %2037 = shalt.err (!%p2034_p0)
}
  0x8d   : > { %p2790_p4 = scmp.ne.s32.totalorder %s2777_s24, 0  ;;  %s2791_s1 = smov 8  }
  0x8e   : > { %s2792_s11 = smov 128   ;;  %s2499_s13 = scalar_lea.hbm %s2737_s0, %s2426_s25 }
  0x8f   : > { %1836 = dma.hbm_to_vmem [thread:$0]  (!%p2790_p4), %s2745_s8, 512, %s339_s18, [#allocation12], %s2792_s11, %s2792_s11, %s2791_s1  }
  0x90   : > { %s359_s24 = scalar_lea.vmem [#allocation2], %s2423_s26  ;;  %s2793_s10 = sand.u32 1, %s2206_s15  }
  0x91   : > { %s366_s30 = sshll.u32 %s359_s24, 4  ;;  %s356_s20 = scalar_lea.sflag [#allocation3], %s2793_s10  ;;  %s367_s30 = int_to_ptr.vmem [resolvable:$true] %s366_s30 }
  0x92   : > { %s2038_s27 = scalar_lea.hbm %s2499_s13, 128  ;;  %s2043_s11 = scalar_lea.hbm %s2737_s0, 256 }
  0x93   : > { %p2039_p0 = scmp.ne.s32.totalorder %s2499_s13, %s2038_s27  ;;  %p2044_p13 = scmp.lt.u32.totalorder %s2499_s13, %s2737_s0 }
  0x94   : > { %p2045_p7 = scmp.lt.u32.totalorder %s2043_s11, %s2038_s27  ;;  %p2047_p9 = scmp.lt.u32.totalorder %s2038_s27, %s2499_s13 }
  0x95   : > { %p2041_p8 = pnand %p2039_p0, %p2450_p2 }
  0x96   : > { %p2046_p10 = por %p2045_p7, %p2044_p13 }
  0x97   : > { %p2042_p11 = pneg %p2041_p8 }
  0x98   : > { %p2048_p12 = por %p2047_p9, %p2046_p10 }
  0x9a   : > { %p2049_p1 = pnand %p2048_p12, %p2042_p11 }
  0x9c   : > { %2052 = shalt.err (!%p2049_p1)
}
  0x9d   : > { %s2053_s12 = scalar_lea.vmem %s367_s30, 128  ;;  %s2218_s22 = smov [#allocation2]  }
  0x9e   : > { %p2054_p6 = scmp.ne.s32.totalorder %s367_s30, %s2053_s12  ;;  %s2058_s24 = sshll.u32 %s2218_s22, 4  ;;  %s2059_s24 = int_to_ptr.vmem [resolvable:$false] %s2058_s24 }
  0x9f   : > { %s2060_s10 = scalar_lea.vmem %s2059_s24, 256  ;;  %p2061_p4 = scmp.lt.s32.totalorder %s367_s30, %s2059_s24 }
  0xa0   : > { %p2056_p3 = pnand %p2054_p6, %p2450_p2  ;;  %p2062_p0 = scmp.lt.s32.totalorder %s2060_s10, %s2053_s12 }
  0xa2   : > { %p2057_p5 = pneg %p2056_p3  ;;  %p2063_p8 = por %p2062_p0, %p2061_p4 }
  0xa4   : > { %p2064_p7 = pnand %p2063_p8, %p2057_p5 }
  0xa6   : > { %2067 = shalt.err (!%p2064_p7)
}
  0xa7   : > { %p2794_p13 = scmp.ne.s32.totalorder %s2786_s23, 0  ;;  %s2525_s1 = scalar_lea.hbm %s2739_s2, %s2426_s25 }
  0xa8   : > { %s395_s11 = scalar_lea.vmem [#allocation7], %s2423_s26  ;;  %s2068_s4 = scalar_lea.hbm %s2525_s1, 128 }
  0xa9   : > { %1840 = dma.hbm_to_vmem [thread:$0]  (!%p2794_p13), %s2499_s13, 128, %s367_s30, %s356_s20  }
  0xaa   : > { %s402_s29 = sshll.u32 %s395_s11, 4  ;;  %p2069_p11 = scmp.ne.s32.totalorder %s2525_s1, %s2068_s4  ;;  %s403_s29 = int_to_ptr.vmem [resolvable:$true] %s402_s29 }
  0xab   : > { %s2073_s13 = scalar_lea.hbm %s2739_s2, 256  ;;  %p2074_p12 = scmp.lt.u32.totalorder %s2525_s1, %s2739_s2 }
  0xac   : > { %p2071_p10 = pnand %p2069_p11, %p2450_p2  ;;  %p2075_p1 = scmp.lt.u32.totalorder %s2073_s13, %s2068_s4 }
  0xad   : > { %p2077_p3 = scmp.lt.u32.totalorder %s2068_s4, %s2525_s1 }
  0xae   : > { %p2072_p9 = pneg %p2071_p10  ;;  %p2076_p6 = por %p2075_p1, %p2074_p12 }
  0xb0   : > { %p2078_p5 = por %p2077_p3, %p2076_p6 }
  0xb2   : > { %p2079_p4 = pnand %p2078_p5, %p2072_p9 }
  0xb4   : > { %2082 = shalt.err (!%p2079_p4)
}
  0xb5   : > { %s2083_s24 = scalar_lea.vmem %s403_s29, 128  ;;  %s2219_s10 = smov [#allocation7]  }
  0xb6   : > { %p2084_p0 = scmp.ne.s32.totalorder %s403_s29, %s2083_s24  ;;  %s2088_s27 = sshll.u32 %s2219_s10, 4  ;;  %s2089_s27 = int_to_ptr.vmem [resolvable:$false] %s2088_s27 }
  0xb7   : > { %s2090_s18 = scalar_lea.vmem %s2089_s27, 256  ;;  %p2091_p11 = scmp.lt.s32.totalorder %s403_s29, %s2089_s27 }
  0xb8   : > { %p2086_p8 = pnand %p2084_p0, %p2450_p2  ;;  %p2092_p10 = scmp.lt.s32.totalorder %s2090_s18, %s2083_s24 }
  0xba   : > { %p2087_p7 = pneg %p2086_p8  ;;  %p2093_p13 = por %p2092_p10, %p2091_p11 }
  0xbc   : > { %p2094_p1 = pnand %p2093_p13, %p2087_p7 }
  0xbe   : > { %2097 = shalt.err (!%p2094_p1)
}
  0xbf   : > { %p2795_p12 = scmp.ne.s32.totalorder %s2786_s23, 0  ;;  %s2550_s12 = scalar_lea.hbm %s2740_s3, %s2426_s25 }
  0xc0   : > { %s413_s22 = scalar_lea.vmem [#allocation8], %s2423_s26  ;;  %s2796_s30 = sand.u32 1, %s2210_s16  }
  0xc1   : > { %1846 = dma.hbm_to_vmem [thread:$0]  (!%p2795_p12), %s2525_s1, 128, %s403_s29, %s2444_s28  }
  0xc2   : > { %s420_s13 = sshll.u32 %s413_s22, 4  ;;  %s410_s20 = scalar_lea.sflag [#allocation9], %s2796_s30  ;;  %s421_s13 = int_to_ptr.vmem [resolvable:$true] %s420_s13 }
  0xc3   : > { %s2098_s24 = scalar_lea.hbm %s2550_s12, 128  ;;  %s2103_s29 = scalar_lea.hbm %s2740_s3, 256 }
  0xc4   : > { %p2099_p13 = scmp.ne.s32.totalorder %s2550_s12, %s2098_s24  ;;  %p2104_p3 = scmp.lt.u32.totalorder %s2550_s12, %s2740_s3 }
  0xc5   : > { %p2105_p5 = scmp.lt.u32.totalorder %s2103_s29, %s2098_s24  ;;  %p2107_p0 = scmp.lt.u32.totalorder %s2098_s24, %s2550_s12 }
  0xc6   : > { %p2101_p9 = pnand %p2099_p13, %p2450_p2 }
  0xc7   : > { %p2106_p4 = por %p2105_p5, %p2104_p3 }
  0xc8   : > { %p2102_p6 = pneg %p2101_p9 }
  0xc9   : > { %p2108_p8 = por %p2107_p0, %p2106_p4 }
  0xcb   : > { %p2109_p7 = pnand %p2108_p8, %p2102_p6 }
  0xcd   : > { %2112 = shalt.err (!%p2109_p7)
}
  0xce   : > { %s2113_s26 = scalar_lea.vmem %s421_s13, 128  ;;  %s2220_s27 = smov [#allocation8]  }
  0xcf   : > { %p2114_p11 = scmp.ne.s32.totalorder %s421_s13, %s2113_s26  ;;  %s2118_s18 = sshll.u32 %s2220_s27, 4  ;;  %s2119_s18 = int_to_ptr.vmem [resolvable:$false] %s2118_s18 }
  0xd0   : > { %s2120_s11 = scalar_lea.vmem %s2119_s18, 256  ;;  %p2121_p13 = scmp.lt.s32.totalorder %s421_s13, %s2119_s18 }
  0xd1   : > { %p2116_p10 = pnand %p2114_p11, %p2450_p2  ;;  %p2122_p9 = scmp.lt.s32.totalorder %s2120_s11, %s2113_s26 }
  0xd3   : > { %p2117_p1 = pneg %p2116_p10  ;;  %p2123_p12 = por %p2122_p9, %p2121_p13 }
  0xd5   : > { %p2124_p3 = pnand %p2123_p12, %p2117_p1 }
  0xd7   : > { %2127 = shalt.err (!%p2124_p3)
}
  0xd8   : > { %p2797_p5 = scmp.ne.s32.totalorder %s2786_s23, 0  ;;  %p2798_p6 = scmp.ne.s32.totalorder %s2776_s21, 0 }
  0xd9   : > { %s2575_s6 = sand.u32 (!%p2798_p6), 1, %s2202_s14   ;;  %p2799_p2 = scmp.ne.s32.totalorder (!%p2798_p6), %s2773_s19, 0 }
  0xda   : > { %1849 = dma.hbm_to_vmem [thread:$0]  (!%p2797_p5), %s2550_s12, 128, %s421_s13, %s410_s20  }
  0xdb   : > { %429 = sbr.rel (%p2798_p6) target bundleno = 1462 (0x5b6), region = 60  ;;  %s2578_s4 = sshll.u32 (!%p2798_p6), %s2575_s6, 3 }
  0xdc   : > { %s432_s22 = scalar_lea.sflag (!%p2798_p6), [#allocation3], %s2575_s6  ;;  %s435_s30 = scalar_lea.vmem (!%p2798_p6), [#allocation2], %s2578_s4 }
  0xe2   : > { %2173 = dma.done.wait (%p2799_p2), %s432_s22, 128  }
  0xe3   : > { %2175 = vsyncadd (%p2799_p2), %s432_s22, 4294967168  ;;  %s440_s21 = sand.u32 1, %s2307_s17   ;;  %s444_s12 = scalar_lea.vmem [#allocation5], %s2578_s4 }
  0xe4   : > { %s441_s23 = scalar_lea.sflag [#allocation6], %s440_s21 }
  0xe5   : > { %2177 = dma.done.wait (%p2799_p2), %s441_s23, 256  }
  0xe6   : > { %2179 = vsyncadd (%p2799_p2), %s441_s23, 4294967040  ;;  %s453_s13 = scalar_lea.vmem [#allocation7], %s2578_s4  ;;  %s459_s20 = scalar_lea.sflag [#allocation9], %s440_s21 }
  0xe7   : > { %s462_s24 = scalar_lea.vmem [#allocation8], %s2578_s4 }
  0xe8   : > { %2181 = dma.done.wait (%p2799_p2), %s459_s20, 128  }
  0xe9   : > { %2183 = vsyncadd (%p2799_p2), %s459_s20, 4294967168  ;;  %p2800_p12 = scmp.eq.s32.totalorder %s2307_s17, 0 }
  0xeb   : > { %2185 = dma.done.wait (%p2800_p12), [#allocation9], 512   ;;  %p2801_p4 = pmov %p2800_p12 }
  0xed   : > { %2187 = vsyncadd (%p2801_p4), [#allocation9], 4294966784  ;;  %p2802_p0 = pmov %p2801_p4 }
  0xef   : > { %2189 = dma.done.wait (%p2802_p0), [#allocation12], 1024   ;;  %p2803_p8 = pmov %p2802_p0 }
  0xf0   : > { %v2221_v0 = vmov 0.0|0.0   ;;  %vm2222_vm0 = vmmov 0   ;;  %v2223_v1 = vmov 0.0   ;;  %v617_v2 = vld [vmem:[#allocation11] sm:$0xff]  ;;  %v618_v3 = vld [vmem:[#allocation11 + $0x8] sm:$0xff]  ;;  %v619_v7 = vld [vmem:[#allocation11 + $0x10] sm:$0xff] }
  0xf1   : > { %2191 = vsyncadd (%p2803_p8), [#allocation12], 4294966272  ;;  %1793 = vmatprep.subr.bf16.mxu1 %v2221_v0  ;;  %1787 = vmatprep.subr.bf16.mxu0 %v2221_v0  ;;  %v532_v4 = vld [vmem:[#allocation10] sm:$0xff]  ;;  %v1794_v5 = vpack.c.bf16 %v618_v3, %v617_v2  ;;  %v533_v6 = vld [vmem:[#allocation10 + $0x8] sm:$0xff]  ;;  %vm543_vm1 = vcmask 261120   ;;  %vm785_vm2 = vcmask 64512  }
  0xf2   : > { %1733 = vmatprep.mubr.msk.f32.mxu1 %vm2222_vm0, %v2223_v1  ;;  %1722 = vmatprep.mubr.msk.f32.mxu0 %vm2222_vm0, %v2223_v1  ;;  %v620_v8 = vld [vmem:[#allocation11 + $0x18] sm:$0xff]  ;;  %v1788_v9 = vpack.c.bf16 %v533_v6, %v532_v4  ;;  %v534_v10 = vld [vmem:[#allocation10 + $0x10] sm:$0xff]  ;;  %v526_v15 = vld [vmem:[%s435_s30] sm:$0xff]  ;;  %s2224_s25 = smov 112   ;;  %s2225_s10 = smov 120   ;;  %vm1455_vm4 = vcmask 130048  }
  0xf3   : > { %v535_v11 = vld [vmem:[#allocation10 + $0x18] sm:$0xff]  ;;  %1795 = vmatpush3.bf16.msra.mxu1 %v1794_v5  ;;  %v1797_v12 = vpack.c.bf16 %v620_v8, %v619_v7  ;;  %v701_v16 = vld [vmem:[#allocation13] sm:$0xff]  ;;  %v702_v17 = vld [vmem:[#allocation13 + $0x8] sm:$0xff]  ;;  %s2226_s26 = smov 104   ;;  %s2227_s11 = smov 8   ;;  %vm1457_vm5 = vcmask 195584  }
  0xf4   : > { %1789 = vmatpush3.bf16.msra.mxu0 %v1788_v9  ;;  %1796 = vmatprep.subr.bf16.mxu1 %v2221_v0  ;;  %v1791_v13 = vpack.c.bf16 %v535_v11, %v534_v10  ;;  %v527_v14 = vld [vmem:[%s444_s12] sm:$0xff]  ;;  %v1800_v19 = vpack.c.bf16 %v702_v17, %v701_v16  ;;  %v528_v22 = vld [vmem:[%s453_s13] sm:$0xff]  ;;  %s2228_s22 = smov 16   ;;  %s2229_s30 = smov 24  }
  0xf5   : > { %1790 = vmatprep.subr.bf16.mxu0 %v2221_v0  ;;  %v703_v18 = vld [vmem:[#allocation13 + $0x10] sm:$0xff]  ;;  %v704_v20 = vld [vmem:[#allocation13 + $0x18] sm:$0xff]  ;;  %v1663_v23 = vld [vmem:[%s2744_s7] ss:$0 sm:$0xff]  ;;  %s2804_s21 = sld [smem:[#allocation24_spill]]  ;;  %s1680_s23 = sshll.u32 %s2307_s17, 7 }
  0xf6   : > { %v1803_v21 = vpack.c.bf16 %v704_v20, %v703_v18  ;;  %v1661_v25 = vld [vmem:[%s2742_s5] ss:$0 sm:$0xff]  ;;  %v529_v41 = vld [vmem:[%s462_s24] sm:$0xff]  ;;  %s525_s12 = scalar_lea.vmem [#allocation14], %s2578_s4  ;;  %s2805_s19 = sld [smem:[#allocation29_spill]] }
  0xf7   : > { %1798 = vmatpush3.bf16.msra.mxu1 %v1797_v12  ;;  %v1665_v37 = vld [vmem:[%s2746_s9] ss:$0 sm:$0xff]  ;;  %vm530_vm3 = vcmp.eq.f32.partialorder %v529_v41, 0.0  ;;  %s1474_s13 = sshll.u32 %s525_s12, 4  ;;  %s1461_s17 = scalar_lea.sflag [#allocation4], %s2575_s6  ;;  %s2694_s13 = int_to_ptr.vmem [resolvable:$true] %s1474_s13 }
  0xf8   : > { %1792 = vmatpush3.bf16.msra.mxu0 %v1791_v13  ;;  %1747 = vmatprep.subr.mxu1 %v2223_v1  ;;  %v531_v42 = vsel %vm530_vm3, -inf, %v2223_v1  ;;  %s2128_s4 = scalar_lea.vmem %s2694_s13, 128  ;;  %s2230_s1 = smov [#allocation14]  }
  0xf9   : > { %1799 = vmatprep.subr.bf16.mxu0 %v2221_v0  ;;  %p2129_p7 = scmp.ne.s32.totalorder %s2694_s13, %s2128_s4  ;;  %s2132_s29 = sshll.u32 %s2230_s1, 4  ;;  %s2133_s29 = int_to_ptr.vmem [resolvable:$false] %s2132_s29 }
  0xfa   : > { %1734 = vmatmul.mubr.msk.f32.vlgmr.msra.gmra.mrb[0].mxu1 %vm543_vm1, %v527_v14  ;;  %p2135_p13 = scmp.lt.s32.totalorder %s2694_s13, %s2133_s29 }
  0xfb   : > { %1723 = vmatmul.mubr.msk.f32.vlgmr.msra.gmra.mrb[0].mxu0 %vm543_vm1, %v526_v15  ;;  %1749 = vmatprep.mubr.msk.f32.mxu1 %vm2222_vm0, %v2223_v1  ;;  %p2806_p11 = scmp.ne.s32.totalorder %s2804_s21, 0 }
  0xfc   : > { %1744 = vmatprep.mubr.msk.f32.mxu0 %vm2222_vm0, %v2223_v1  ;;  %1801 = vmatpush3.bf16.msra.mxu0 %v1800_v19  ;;  %s2692_s28 = scalar_lea.hbm %s2805_s19, %s1680_s23 }
  0xfd   : > { %1802 = vmatprep.subr.bf16.mxu0 %v2221_v0  ;;  %p2130_p10 = pnand %p2129_p7, %p2806_p11 }
  0xff   : > { %p2131_p1 = pneg %p2130_p10 }
 0x100   : > { %1804 = vmatpush3.bf16.msra.mxu0 %v1803_v21 }
 0x101   : > { %1757 = vmatprep.subr.mxu0 %v2223_v1 }
 0x103   : > { %1745 = vmatmul.mubr.msk.f32.vlgmr.msra.gmra.mrb[2].mxu0 %vm543_vm1, %v528_v22 }
 0x104   : > { %1759 = vmatprep.mubr.msk.f32.mxu0 %vm2222_vm0, %v2223_v1 }
 0x1cd   : > { %v697_v24 = vpop.f32.mrb[0].mxu1 }
 0x1ce   : > { %v698_v26 = vadd.f32 %v1663_v23, %v697_v24  ;;  %v1735_v27 = vpop.f32.mrb[1].mxu1  ;;  %v613_v28 = vpop.f32.mrb[0].mxu0 }
 0x1cf   : > { %v1724_v29 = vpop.f32.mrb[1].mxu0  ;;  %v614_v30 = vadd.f32 %v1661_v25, %v613_v28 }
 0x1d0   : > { %1114 = vrot.lane.b32.xlu1 %v698_v26, %s2224_s25  ;;  %948 = vrot.lane.b32.xlu0 %v698_v26, %s2225_s10 }
 0x1d1   : > { %1748 = vmatpush3.xpose.msk.msra.mxu1 %vm785_vm2, %v698_v26 }
 0x1d2   : > { %1752 = vmatprep.subr.mxu1 %v2223_v1 }
 0x1d4   : > { %1750 = vmatmul.mubr.msk.f32.vlgmr.msra.gmra.mrb[2].mxu1 %vm785_vm2, %v614_v30  ;;  %1112 = vrot.lane.b32.xlu1 %v614_v30, %s2224_s25 }
 0x1d5   : > { %946 = vrot.lane.b32.xlu0 %v614_v30, %s2225_s10  ;;  %1754 = vmatprep.mubr.msk.f32.mxu1 %vm2222_vm0, %v2223_v1 }
 0x1d6   : > { %v781_v38 = vpop.f32.mrb[2].mxu0 }
 0x1d7   : > { %v782_v39 = vadd.f32 %v1665_v37, %v781_v38  ;;  %v1746_v40 = vpop.f32.mrb[3].mxu0 }
 0x1d8   : > { %1277 = vrot.lane.b32.xlu1 %v614_v30, %s2226_s26 }
 0x1d9   : > { %1279 = vrot.lane.b32.xlu0 %v698_v26, %s2226_s26  ;;  %1753 = vmatpush3.msra.mxu1 %v782_v39 }
 0x1da   : > { %1762 = vmatprep.subr.mxu1 %v2223_v1 }
 0x242   : > { %v949_v31 = vpop.permute.xlu0 %948  ;;  %v1115_v32 = vpop.permute.xlu1 %1114 }
 0x243   : > { %1758 = vmatpush3.xpose.msk.msra.mxu0 %vm785_vm2, %v949_v31 }
 0x244   : > { %1767 = vmatprep.subr.mxu0 %v2223_v1 }
 0x246   : > { %v1113_v34 = vpop.permute.xlu1 %1112 }
 0x247   : > { %v947_v33 = vpop.permute.xlu0 %946 }
 0x248   : > { %1760 = vmatmul.mubr.msk.f32.vlgmr.msra.gmra.mrb[4].mxu0 %vm785_vm2, %v947_v33 }
 0x249   : > { %1768 = vmatpush3.xpose.msk.msra.mxu0 %vm785_vm2, %v1115_v32  ;;  %1769 = vmatprep.mubr.msk.f32.mxu0 %vm2222_vm0, %v2223_v1 }
 0x24a   : > { %1777 = vmatprep.subr.mxu0 %v2223_v1  ;;  %v1278_v36 = vpop.permute.xlu1 %1277 }
 0x24b   : > { %v1280_v35 = vpop.permute.xlu0 %1279 }
 0x24c   : > { %1770 = vmatmul.mubr.msk.f32.vlgmr.msra.gmra.mrb[6].mxu0 %vm785_vm2, %v1113_v34 }
 0x24d   : > { %1778 = vmatpush3.xpose.msk.msra.mxu0 %vm785_vm2, %v1280_v35  ;;  %1779 = vmatprep.mubr.msk.f32.mxu0 %vm2222_vm0, %v2223_v1 }
 0x250   : > { %1780 = vmatmul.mubr.msk.f32.vlgmr.msra.gmra.mrb[8].mxu0 %vm785_vm2, %v1278_v36 }
 0x2a7   : > { %v858_v43 = vpop.f32.mrb[2].mxu1 }
 0x2a8   : > { %v859_v44 = vadd.f32 %v858_v43, %v531_v42  ;;  %v1751_v45 = vpop.f32.mrb[3].mxu1 }
 0x2aa   : > { %v862_v46 = vsel %vm785_vm2, %v859_v44, -inf }
 0x2ab   : > { %863 = vmax.xlane.f32.xlu0 %v862_v46 }
 0x31b   : > { %v1020_v47 = vpop.f32.mrb[4].mxu0 }
 0x31c   : > { %v1021_v48 = vadd.f32 %v1020_v47, %v531_v42  ;;  %v1761_v49 = vpop.f32.mrb[5].mxu0 }
 0x31e   : > { %v1024_v50 = vsel %vm785_vm2, %v1021_v48, -inf }
 0x31f   : > { %1025 = vmax.xlane.f32.xlu1 %v1024_v50  ;;  %v1186_v51 = vpop.f32.mrb[6].mxu0 }
 0x320   : > { %v1187_v52 = vadd.f32 %v1186_v51, %v531_v42  ;;  %v1771_v53 = vpop.f32.mrb[7].mxu0 }
 0x322   : > { %v1190_v54 = vsel %vm785_vm2, %v1187_v52, -inf }
 0x323   : > { %1191 = vmax.xlane.f32.xlu0 %v1190_v54  ;;  %v1351_v55 = vpop.f32.mrb[8].mxu0 }
 0x324   : > { %v1352_v56 = vadd.f32 %v1351_v55, %v531_v42  ;;  %v1781_v57 = vpop.f32.mrb[9].mxu0 }
 0x326   : > { %v1355_v58 = vsel %vm785_vm2, %v1352_v56, -inf }
 0x327   : > { %1356 = vmax.xlane.f32.xlu0 %v1355_v58 }
 0x330   : > { %1036 = vrot.lane.b32.xlu1 %v782_v39, %s2225_s10 }
 0x338   : > { %v864_v59 = vpop.xlane.xlu0 %863 }
 0x339   : > { %v865_v60 = vsub.f32 %v859_v44, %v864_v59 }
 0x33b   : > { %v866_v61 = vmul.f32 1.442695, %v865_v60 }
 0x33d   : > { %1908 = vpow2.f32 %v866_v61 }
 0x347   : > { %v1909_v62 = vpop.eup %1908 }
 0x348   : > { %v868_v63 = vsel %vm785_vm2, %v1909_v62, 0.0 }
 0x354   : > { %869 = vadd.xlane.f32.xlu1 %v868_v63 }
 0x3ac   : > { %v1026_v0 = vpop.xlane.xlu1 %1025 }
 0x3ad   : > { %v1027_v2 = vsub.f32 %v1021_v48, %v1026_v0 }
 0x3af   : > { %v1028_v3 = vmul.f32 1.442695, %v1027_v2 }
 0x3b0   : > { %v1192_v4 = vpop.xlane.xlu0 %1191  ;;  %v1037_v16 = vpop.permute.xlu1 %1036 }
 0x3b1   : > { %1910 = vpow2.f32 %v1028_v3  ;;  %v1193_v5 = vsub.f32 %v1187_v52, %v1192_v4 }
 0x3b3   : > { %v1194_v6 = vmul.f32 1.442695, %v1193_v5 }
 0x3b4   : > { %v1357_v7 = vpop.xlane.xlu0 %1356 }
 0x3b5   : > { %1912 = vpow2.f32 %v1194_v6  ;;  %v1358_v8 = vsub.f32 %v1352_v56, %v1357_v7 }
 0x3b7   : > { %v1359_v9 = vmul.f32 1.442695, %v1358_v8 }
 0x3b9   : > { %1914 = vpow2.f32 %v1359_v9 }
 0x3bb   : > { %v1911_v10 = vpop.eup %1910 }
 0x3bc   : > { %v1030_v11 = vsel %vm785_vm2, %v1911_v10, 0.0 }
 0x3bd   : > { %1031 = vadd.xlane.f32.xlu0 %v1030_v11 }
 0x3bf   : > { %v1913_v12 = vpop.eup %1912 }
 0x3c0   : > { %v1196_v13 = vsel %vm785_vm2, %v1913_v12, 0.0 }
 0x3c1   : > { %1197 = vadd.xlane.f32.xlu1 %v1196_v13 }
 0x3c3   : > { %v1915_v14 = vpop.eup %1914 }
 0x3c4   : > { %v1361_v15 = vsel %vm785_vm2, %v1915_v14, 0.0 }
 0x3c5   : > { %1362 = vadd.xlane.f32.xlu0 %v1361_v15 }
 0x3d2   : > { %1366 = vrot.lane.b32.xlu1 %v782_v39, %s2226_s26 }
 0x3db   : > { %1201 = vrot.lane.b32.xlu0 %v782_v39, %s2224_s25  ;;  %s2134_s25 = scalar_lea.vmem %s2133_s29, 256 }
 0x3dc   : > { %p2136_p9 = scmp.lt.s32.totalorder %s2134_s25, %s2128_s4 }
 0x3de   : > { %p2137_p3 = por %p2136_p9, %p2135_p13 }
 0x3e0   : > { %p2138_p5 = pnand %p2137_p3, %p2131_p1 }
 0x3e1   : > { %v870_v17 = vpop.xlane.xlu1 %869 }
 0x3e2   : > { %1916 = vrcp.f32 %v870_v17 }
 0x3ec   : > { %v1917_v18 = vpop.eup %1916 }
 0x3ed   : > { %v872_v19 = vmul.f32 %v1917_v18, %v1909_v62 }
 0x3ef   : > { %1755 = vmatmul.mubr.msk.f32.vlgmr.msra.gmra.mrb[4].mxu1 %vm785_vm2, %v872_v19 }
 0x3f0   : > { %1763 = vmatpush3.msra.mxu1 %v1037_v16  ;;  %1764 = vmatprep.mubr.msk.f32.mxu1 %vm2222_vm0, %v2223_v1 }
 0x3f1   : > { %1772 = vmatprep.subr.mxu1 %v2223_v1 }
 0x44a   : > { %v1032_v20 = vpop.xlane.xlu0 %1031 }
 0x44b   : > { %1918 = vrcp.f32 %v1032_v20 }
 0x44e   : > { %v1198_v21 = vpop.xlane.xlu1 %1197 }
 0x44f   : > { %1920 = vrcp.f32 %v1198_v21 }
 0x452   : > { %v1363_v22 = vpop.xlane.xlu0 %1362  ;;  %v1367_v28 = vpop.permute.xlu1 %1366 }
 0x453   : > { %1922 = vrcp.f32 %v1363_v22 }
 0x455   : > { %v1919_v23 = vpop.eup %1918 }
 0x456   : > { %v1034_v24 = vmul.f32 %v1919_v23, %v1911_v10  ;;  %v1202_v25 = vpop.permute.xlu0 %1201 }
 0x458   : > { %1765 = vmatmul.mubr.msk.f32.vlgmr.msra.gmra.mrb[6].mxu1 %vm785_vm2, %v1034_v24 }
 0x459   : > { %v1921_v26 = vpop.eup %1920  ;;  %1773 = vmatpush3.msra.mxu1 %v1202_v25  ;;  %1774 = vmatprep.mubr.msk.f32.mxu1 %vm2222_vm0, %v2223_v1 }
 0x45a   : > { %v1200_v27 = vmul.f32 %v1921_v26, %v1913_v12  ;;  %1782 = vmatprep.subr.mxu1 %v2223_v1 }
 0x45c   : > { %1775 = vmatmul.mubr.msk.f32.vlgmr.msra.gmra.mrb[8].mxu1 %vm785_vm2, %v1200_v27 }
 0x45d   : > { %v1923_v29 = vpop.eup %1922  ;;  %1783 = vmatpush3.msra.mxu1 %v1367_v28  ;;  %1784 = vmatprep.mubr.msk.f32.mxu1 %vm2222_vm0, %v2223_v1 }
 0x45e   : > { %v1365_v30 = vmul.f32 %v1923_v29, %v1915_v14 }
 0x460   : > { %1785 = vmatmul.mubr.msk.f32.vlgmr.msra.gmra.mrb[10].mxu1 %vm785_vm2, %v1365_v30 }
 0x4c2   : > { %v942_v31 = vpop.f32.mrb[4].mxu1 }
 0x4c3   : > { %v1756_v32 = vpop.f32.mrb[5].mxu1 }
 0x52b   : > { %v1108_v33 = vpop.f32.mrb[6].mxu1 }
 0x52c   : > { %1443 = vrot.lane.b32.xlu1 %v1108_v33, %s2227_s11  ;;  %v1766_v34 = vpop.f32.mrb[7].mxu1 }
 0x52f   : > { %v1273_v35 = vpop.f32.mrb[8].mxu1 }
 0x530   : > { %1447 = vrot.lane.b32.xlu0 %v1273_v35, %s2228_s22  ;;  %v1776_v36 = vpop.f32.mrb[9].mxu1 }
 0x533   : > { %v1438_v37 = vpop.f32.mrb[10].mxu1 }
 0x534   : > { %1451 = vrot.lane.b32.xlu1 %v1438_v37, %s2229_s30  ;;  %v1786_v1 = vpop.f32.mrb[11].mxu1 }
 0x59e   : > { %v1444_v38 = vpop.permute.xlu1 %1443 }
 0x59f   : > { %v1454_v40 = vsel %vm785_vm2, %v942_v31, %v1444_v38 }
 0x5a2   : > { %v1448_v39 = vpop.permute.xlu0 %1447 }
 0x5a3   : > { %v1456_v41 = vsel %vm1455_vm4, %v1454_v40, %v1448_v39 }
 0x5a6   : > { %v1452_v42 = vpop.permute.xlu1 %1451 }
 0x5a7   : > { %v1458_v43 = vsel %vm1457_vm5, %v1456_v41, %v1452_v42 }
 0x5a8   : > { %1459 = vst.msk [vmem:[%s525_s12] sm:$0xff] %vm543_vm1, %v1458_v43 }
 0x5a9   : > { %2141 = shalt.err (!%p2138_p5)
}
 0x5aa   : > { %s2142_s6 = scalar_lea.hbm %s2692_s28, 128  ;;  %s2146_s27 = scalar_lea.hbm %s2805_s19, 256 }
 0x5ab   : > { %p2143_p6 = scmp.ne.s32.totalorder %s2692_s28, %s2142_s6  ;;  %p2147_p4 = scmp.lt.u32.totalorder %s2692_s28, %s2805_s19 }
 0x5ac   : > { %p2148_p0 = scmp.lt.u32.totalorder %s2146_s27, %s2142_s6  ;;  %p2150_p7 = scmp.lt.u32.totalorder %s2142_s6, %s2692_s28 }
 0x5ad   : > { %p2144_p2 = pnand %p2143_p6, %p2806_p11 }
 0x5ae   : > { %p2149_p8 = por %p2148_p0, %p2147_p4 }
 0x5af   : > { %p2145_p12 = pneg %p2144_p2 }
 0x5b0   : > { %p2151_p10 = por %p2150_p7, %p2149_p8 }
 0x5b2   : > { %p2152_p1 = pnand %p2151_p10, %p2145_p12 }
 0x5b4   : > { %2155 = shalt.err (!%p2152_p1)
}
 0x5b5   : > { %1825 = dma.vmem_to_hbm [thread:$0]  (%p2806_p11), %s2694_s13, 128, %s2692_s28, %s1461_s17  }
 0x5b6 PF: > { %s2807_s22 = sld [smem:[#allocation21_spill]]  ;;  %s2808_s30 = sld [smem:[#allocation22_spill]] }
 0x5b7   : > { %p2810_p9 = scmp.ge.s32.totalorder %s2210_s16, 2 }
 0x5bc   : > { %s1486_s23 = sand.u32 1, %s2807_s22   ;;  %p2809_p13 = scmp.ne.s32.totalorder %s2808_s30, 0 }
 0x5bd   : > { %s1487_s12 = scalar_lea.sflag [#allocation4], %s1486_s23 }
 0x5be   : > { %p1851_p3 = pnand %p2810_p9, %p2809_p13 }
 0x5c0   : > { %2193 = dma.done.wait (!%p1851_p3), %s1487_s12, 128  }
 0x5c1   : > { %2195 = vsyncadd (!%p1851_p3), %s1487_s12, 4294967168  ;;  %s2811_s16 = sld [smem:[#allocation23_spill]]  ;;  %s2812_s20 = sld [smem:[#allocation25_spill]] }
 0x5c2   : > { %s2813_s13 = smov %s2202_s14  ;;  %s2814_s14 = smov %s2206_s15 }
 0x5c7   : > { %p30_p5 = scmp.ge.s32.totalorder %s2811_s16, 4   ;;  %s2815_s15 = smov %s2812_s20 }
 0x5c9   :  { %32 = sbr.rel (!%p30_p5) target bundleno = 15 (0xf), region = 154 }
 0x5d0   :  { %1492 = vsyncpa [#allocation3], 1 }
 0x5d1   :  { %1494 = vsyncpa [#allocation3 + $0x1], 1 }
 0x5d2   :  { %1495 = vsyncpa [#allocation6], 1 }
 0x5d3   :  { %1497 = vsyncpa [#allocation6 + $0x1], 1 }
 0x5d4   :  { %1498 = vsyncpa [#allocation9], 1 }
 0x5d5   :  { %1500 = vsyncpa [#allocation9 + $0x1], 1 }
 0x5d6   :  { %1501 = vsyncpa [#allocation12], 1 }
 0x5d7   :  { %1502 = vsyncpa [#allocation4], 1 }
 0x5d8   :  { %1504 = vsyncpa [#allocation4 + $0x1], 1 }

</bundles_post_ra>
